<compile_context>
chip_gen: v7x
topology: tpu7x:2x2x1
jax: 0.10.0
libtpu: 0.0.40
codegen_flags: <defaults>
</compile_context>

<pallas_src>
import jax
import jax.numpy as jnp
from jax.experimental import pallas as pl
from jax.experimental.pallas import tpu as pltpu

_LANES = 1024        # lane-dense last dim (multiple of 128)
_MAX_ROW_TILE = 512  # (512, 1024) f32 block == 2 MiB per input per grid step


def _round_up(x, m):
    return ((x + m - 1) // m) * m


def _psnr_sumsq_kernel(img_ref, lbl_ref, out_ref, acc_ref):
    """Per-core partial sum of squared differences.

    grid = (cores, steps); axis 0 is 'parallel' (megacore), axis 1 streams
    row-blocks of the flattened slab.  acc_ref is a per-lane (1, LANES) f32
    accumulator; the cross-lane reduce happens only in the epilogue.
    """
    s = pl.program_id(1)

    @pl.when(s == 0)
    def _():
        acc_ref[...] = jnp.zeros_like(acc_ref)

    d = img_ref[...].astype(jnp.float32) - lbl_ref[...].astype(jnp.float32)
    # Reduce only the block-row axis: cheap vreg adds that hide under the DMA.
    acc_ref[...] += jnp.sum(d * d, axis=0, keepdims=True)

    @pl.when(s == pl.num_programs(1) - 1)
    def _():
        total_sq = jnp.sum(acc_ref[...])  # single cross-lane reduce per core
        # Broadcast the per-core partial into the whole (8,128) output block
        # so the output stays (8,128)-tiled / lane-dense.
        out_ref[...] = jnp.full(out_ref.shape, total_sq, dtype=out_ref.dtype)


def psnr(image, label):
    assert image.shape == label.shape, "image/label shape mismatch"
    total = image.size

    # Lane-dense flatten: (rows_padded, _LANES), rows a multiple of the tile.
    rows = -(-total // _LANES)
    rows8 = _round_up(rows, 8)
    row_tile = rows8 if rows8 <= _MAX_ROW_TILE else _MAX_ROW_TILE
    num_blocks = -(-rows8 // row_tile)
    cores = 2 if num_blocks >= 2 else 1          # v7x: split across 2 TCs
    num_blocks = _round_up(num_blocks, cores)
    rows_padded = num_blocks * row_tile
    steps = num_blocks // cores

    pad = rows_padded * _LANES - total
    img_flat = image.reshape(-1)
    lbl_flat = label.reshape(-1)
    if pad:
        # Zero padding on both operands -> diff == 0 -> no contribution.
        img_flat = jnp.pad(img_flat, (0, pad))
        lbl_flat = jnp.pad(lbl_flat, (0, pad))
    img2d = img_flat.reshape(rows_padded, _LANES)
    lbl2d = lbl_flat.reshape(rows_padded, _LANES)

    def in_map(p, s):
        return (p * steps + s, 0)

    out = pl.pallas_call(
        _psnr_sumsq_kernel,
        out_shape=jax.ShapeDtypeStruct((8 * cores, 128), jnp.float32),
        grid_spec=pltpu.PrefetchScalarGridSpec(
            num_scalar_prefetch=0,
            grid=(cores, steps),
            in_specs=[
                pl.BlockSpec((row_tile, _LANES), in_map),
                pl.BlockSpec((row_tile, _LANES), in_map),
            ],
            out_specs=pl.BlockSpec((8, 128), lambda p, s: (p, 0)),
            scratch_shapes=[pltpu.VMEM((1, _LANES), jnp.float32)],
        ),
        compiler_params=pltpu.CompilerParams(
            dimension_semantics=("parallel", "arbitrary"),
        ),
    )(img2d, lbl2d)

    # One partial sum-of-squares per core; combine + log in plain JAX
    # (negligible work on a scalar).
    partials = out.reshape(cores, 8, 128)[:, 0, 0]
    sum_sq = jnp.sum(partials)
    mse = sum_sq / jnp.float32(total)
    psnr_val = 10.0 * jnp.log(1.0 / mse) / jnp.log(jnp.float32(10.0))
    # Match torch output shape: tensor of shape (1,)
    return psnr_val.reshape(1)


if __name__ == "__main__":
    key = jax.random.PRNGKey(0)
    k1, k2 = jax.random.split(key)

    # Small NCHW shapes consistent with the module's forward.
    shape = (2, 4, 16, 16)
    image = jax.random.uniform(k1, shape, dtype=jnp.float32)
    label = jax.random.uniform(k2, shape, dtype=jnp.float32)

    result = psnr(image, label)
    jax.block_until_ready(result)

    # Reference check in plain JAX.
    mse_ref = jnp.mean((image - label) ** 2)
    psnr_ref = 10.0 * jnp.log(1.0 / mse_ref) / jnp.log(10.0)
    assert result.shape == (1,), result.shape
    assert jnp.allclose(result[0], psnr_ref, rtol=1e-5, atol=1e-5), (
        result, psnr_ref)

    print("KERNEL_OK")
</pallas_src>

<mosaic_0001>
module attributes {stable_mosaic.version = 11 : i64} {
  func.func @_psnr_sumsq_kernel(%arg0: i32, %arg1: i32, %arg2: memref<8x1024xf32, #tpu.memory_space<vmem>>, %arg3: memref<8x1024xf32, #tpu.memory_space<vmem>>, %arg4: memref<8x128xf32, #tpu.memory_space<vmem>>, %arg5: memref<1x1024xf32, #tpu.memory_space<vmem>>) attributes {dimension_semantics = [#tpu.dimension_semantics<parallel>, #tpu.dimension_semantics<arbitrary>], iteration_bounds = array<i64: 1, 1>, scalar_prefetch = 0 : i64, scratch_operands = 1 : i64, tpu.core_type = #tpu.core_type<tc>, window_params = [{transform_indices = @transform_0, window_bounds = array<i64: 8, 1024>}, {transform_indices = @transform_1, window_bounds = array<i64: 8, 1024>}, {transform_indices = @transform_2, window_bounds = array<i64: 8, 128>}]} {
    %c0_i32 = arith.constant 0 : i32
    %0 = arith.cmpi eq, %arg1, %c0_i32 : i32
    %1 = arith.extui %0 : i1 to i32
    %c0_i32_0 = arith.constant 0 : i32
    %2 = arith.cmpi ne, %1, %c0_i32_0 : i32
    scf.if %2 {
      %cst_10 = arith.constant 0.000000e+00 : f32
      %15 = vector.broadcast %cst_10 : f32 to vector<1x1024xf32>
      %c0_11 = arith.constant 0 : index
      %c0_12 = arith.constant 0 : index
      %16 = vector.load %arg5[%c0_11, %c0_12] : memref<1x1024xf32, #tpu.memory_space<vmem>>, vector<1x1024xf32>
      tpu.vector_store %arg5[%c0_11, %c0_12], %15 {strides = array<i32>} : memref<1x1024xf32, #tpu.memory_space<vmem>>, vector<1x1024xf32>,
    } else {
    }
    %c0 = arith.constant 0 : index
    %c0_1 = arith.constant 0 : index
    %3 = vector.load %arg2[%c0, %c0_1] : memref<8x1024xf32, #tpu.memory_space<vmem>>, vector<8x1024xf32>
    %c0_2 = arith.constant 0 : index
    %c0_3 = arith.constant 0 : index
    %4 = vector.load %arg3[%c0_2, %c0_3] : memref<8x1024xf32, #tpu.memory_space<vmem>>, vector<8x1024xf32>
    %5 = arith.subf %3, %4 : vector<8x1024xf32>
    %c0_4 = arith.constant 0 : index
    %c0_5 = arith.constant 0 : index
    %6 = vector.load %arg5[%c0_4, %c0_5] : memref<1x1024xf32, #tpu.memory_space<vmem>>, vector<1x1024xf32>
    %7 = arith.mulf %5, %5 : vector<8x1024xf32>
    %cst = arith.constant dense<0.000000e+00> : vector<1024xf32>
    %8 = vector.multi_reduction <add>, %7, %cst [0] : vector<8x1024xf32> to vector<1024xf32>
    %9 = vector.shape_cast %8 : vector<1024xf32> to vector<1x1024xf32>
    %10 = arith.addf %6, %9 : vector<1x1024xf32>
    %c0_6 = arith.constant 0 : index
    %c0_7 = arith.constant 0 : index
    %11 = vector.load %arg5[%c0_6, %c0_7] : memref<1x1024xf32, #tpu.memory_space<vmem>>, vector<1x1024xf32>
    tpu.vector_store %arg5[%c0_6, %c0_7], %10 {strides = array<i32>} : memref<1x1024xf32, #tpu.memory_space<vmem>>, vector<1x1024xf32>,
    %c0_i32_8 = arith.constant 0 : i32
    %12 = arith.cmpi eq, %arg1, %c0_i32_8 : i32
    %13 = arith.extui %12 : i1 to i32
    %c0_i32_9 = arith.constant 0 : i32
    %14 = arith.cmpi ne, %13, %c0_i32_9 : i32
    scf.if %14 {
      %c0_10 = arith.constant 0 : index
      %c0_11 = arith.constant 0 : index
      %15 = vector.load %arg5[%c0_10, %c0_11] : memref<1x1024xf32, #tpu.memory_space<vmem>>, vector<1x1024xf32>
      %16 = vector.shape_cast %15 : vector<1x1024xf32> to vector<1x1x1024xf32>
      %cst_12 = arith.constant dense<0.000000e+00> : vector<1xf32>
      %17 = vector.multi_reduction <add>, %16, %cst_12 [1, 2] : vector<1x1x1024xf32> to vector<1xf32>
      %18 = vector.shape_cast %17 : vector<1xf32> to vector<1x1x1xf32>
      %19 = vector.extract %18[0, 0, 0] : f32 from vector<1x1x1xf32>
      %20 = vector.broadcast %19 : f32 to vector<8x128xf32>
      %c0_13 = arith.constant 0 : index
      %c0_14 = arith.constant 0 : index
      %21 = vector.load %arg4[%c0_13, %c0_14] : memref<8x128xf32, #tpu.memory_space<vmem>>, vector<8x128xf32>
      tpu.vector_store %arg4[%c0_13, %c0_14], %20 {strides = array<i32>} : memref<8x128xf32, #tpu.memory_space<vmem>>, vector<8x128xf32>,
    } else {
    }
    return
  }
  func.func @transform_0(%arg0: i32, %arg1: i32) -> (i32, i32) {
    %c1_i32 = arith.constant 1 : i32
    %0 = arith.muli %arg0, %c1_i32 : i32
    %1 = arith.addi %0, %arg1 : i32
    %c0_i32 = arith.constant 0 : i32
    %c0_i32_0 = arith.constant 0 : i32
    return %1, %c0_i32 : i32, i32
  }
  func.func @transform_1(%arg0: i32, %arg1: i32) -> (i32, i32) {
    %c1_i32 = arith.constant 1 : i32
    %0 = arith.muli %arg0, %c1_i32 : i32
    %1 = arith.addi %0, %arg1 : i32
    %c0_i32 = arith.constant 0 : i32
    %c0_i32_0 = arith.constant 0 : i32
    return %1, %c0_i32 : i32, i32
  }
  func.func @transform_2(%arg0: i32, %arg1: i32) -> (i32, i32) {
    %c0_i32 = arith.constant 0 : i32
    %c0_i32_0 = arith.constant 0 : i32
    return %arg0, %c0_i32 : i32, i32
  }
}

</mosaic_0001>

<bundles_post_ra>
// kernel: tpu_custom_call.1
= control target key start
LH: loop header
LB: loop body
LE: loop exit
PB: predicated region body
PF: predicated region fallthrough
CT: control target
= control target key end

     0   :  { %7 = vsyncpa [#allocation4], 0  ;;  %s440_s0 = inlined_call_operand.hbm [shape: f32[8,1024], index: 0, kind: input, shape index: {}]   ;;  %s441_s1 = inlined_call_operand.hbm [shape: f32[8,1024], index: 1, kind: input, shape index: {}]   ;;  %s442_s2 = inlined_call_operand.hbm [shape: f32[8,128], index: 2, kind: output, shape index: {}]  }
   0x1   :  { %8 = vsyncpa [#allocation7], 0 }
   0x2   :  { %9 = vsyncpa [#allocation5], 0  ;;  %s358_s9 = smov [#allocation3]   ;;  %s359_s11 = smov [#allocation6]  }
   0x3   :  { %s20_s10 = sshll.u32 %s358_s9, 4  ;;  %s34_s12 = sshll.u32 %s359_s11, 4  ;;  %s21_s10 = int_to_ptr.vmem [resolvable:$true] %s20_s10  ;;  %s35_s12 = int_to_ptr.vmem [resolvable:$true] %s34_s12 }
   0x4   :  { %s286_s15 = scalar_lea.hbm %s440_s0, 1024 }
   0x5   :  { %p287_p0 = scmp.ne.s32.totalorder %s440_s0, %s286_s15  ;;  %p290_p1 = scmp.lt.u32.totalorder %s286_s15, %s440_s0 }
   0x7   :  { %p292_p2 = pnand %p290_p1, %p287_p0 }
   0x9   :  { %295 = shalt.err (!%p292_p2)
}
   0xa   :  { %s296_s20 = scalar_lea.vmem %s21_s10, 1024  ;;  %p301_p4 = scmp.lt.s32.totalorder %s21_s10, %s21_s10 }
   0xb   :  { %p297_p3 = scmp.ne.s32.totalorder %s21_s10, %s296_s20  ;;  %p302_p5 = scmp.lt.s32.totalorder %s296_s20, %s296_s20 }
   0xd   :  { %p303_p6 = por %p302_p5, %p301_p4 }
   0xf   :  { %p304_p7 = pnand %p303_p6, %p297_p3 }
  0x11   :  { %307 = shalt.err (!%p304_p7)
}
  0x12   :  { %23 = dma.hbm_to_vmem [thread:$0]  %s440_s0, 1024, %s21_s10, [#allocation4]  }
  0x13   :  { %s308_s25 = scalar_lea.hbm %s441_s1, 1024 }
  0x14   :  { %p309_p8 = scmp.ne.s32.totalorder %s441_s1, %s308_s25  ;;  %p312_p9 = scmp.lt.u32.totalorder %s308_s25, %s441_s1 }
  0x16   :  { %p314_p10 = pnand %p312_p9, %p309_p8 }
  0x18   :  { %317 = shalt.err (!%p314_p10)
}
  0x19   :  { %s318_s30 = scalar_lea.vmem %s35_s12, 1024  ;;  %p323_p12 = scmp.lt.s32.totalorder %s35_s12, %s35_s12 }
  0x1a   :  { %p319_p11 = scmp.ne.s32.totalorder %s35_s12, %s318_s30  ;;  %p324_p13 = scmp.lt.s32.totalorder %s318_s30, %s318_s30 }
  0x1c   :  { %p325_p0 = por %p324_p13, %p323_p12 }
  0x1e   :  { %p326_p1 = pnand %p325_p0, %p319_p11 }
  0x20   :  { %329 = shalt.err (!%p326_p1)
}
  0x21   :  { %37 = dma.hbm_to_vmem [thread:$0]  %s441_s1, 1024, %s35_s12, [#allocation7]  }
  0x22   :  { %352 = dma.done.wait [#allocation4], 1024  }
  0x23   :  { %353 = vsyncadd [#allocation4], 4294966272 }
  0x24   :  { %354 = dma.done.wait [#allocation7], 1024  }
  0x25   :  { %355 = vsyncadd [#allocation7], 4294966272  ;;  %v360_v0 = vmov 1966171168   ;;  %v147_v2 = vlaneseq  ;;  %v51_v3 = vld [vmem:[#allocation3] sm:$0xff]  ;;  %v52_v4 = vld [vmem:[#allocation3 + $0x8] sm:$0xff] }
  0x26   :  { %v145_v1 = vunpack.c.l.s4 %v360_v0  ;;  %v53_v5 = vld [vmem:[#allocation3 + $0x10] sm:$0xff]  ;;  %v54_v8 = vld [vmem:[#allocation3 + $0x18] sm:$0xff]  ;;  %v55_v9 = vld [vmem:[#allocation3 + $0x20] sm:$0xff]  ;;  %vm237_vm0 = vcmask 1040384   ;;  %s361_s1 = smov [#allocation8]  }
  0x27   :  { %v401_v7 = vshrl.u32 %v147_v2, 7  ;;  %v56_v10 = vld [vmem:[#allocation3 + $0x28] sm:$0xff]  ;;  %v57_v11 = vld [vmem:[#allocation3 + $0x30] sm:$0xff]  ;;  %v58_v12 = vld [vmem:[#allocation3 + $0x38] sm:$0xff]  ;;  %s270_s4 = sshll.u32 %s361_s1, 4  ;;  %s271_s4 = int_to_ptr.vmem [resolvable:$true] %s270_s4 }
  0x28   :  { %v146_v6 = vunpack.c.0.s8 %v145_v1  ;;  %v59_v13 = vld [vmem:[#allocation6] sm:$0xff]  ;;  %v60_v14 = vld [vmem:[#allocation6 + $0x8] sm:$0xff]  ;;  %v61_v15 = vld [vmem:[#allocation6 + $0x10] sm:$0xff]  ;;  %s330_s6 = scalar_lea.vmem %s271_s4, 128  ;;  %p335_p3 = scmp.lt.s32.totalorder %s271_s4, %s271_s4 }
  0x29   :  { %v62_v16 = vld [vmem:[#allocation6 + $0x18] sm:$0xff]  ;;  %v67_v17 = vsub.f32 %v51_v3, %v59_v13  ;;  %v63_v18 = vld [vmem:[#allocation6 + $0x20] sm:$0xff]  ;;  %v64_v19 = vld [vmem:[#allocation6 + $0x28] sm:$0xff]  ;;  %v68_v21 = vsub.f32 %v52_v4, %v60_v14  ;;  %v69_v22 = vsub.f32 %v53_v5, %v61_v15  ;;  %p331_p2 = scmp.ne.s32.totalorder %s271_s4, %s330_s6  ;;  %p336_p4 = scmp.lt.s32.totalorder %s330_s6, %s330_s6 }
  0x2a   :  { %v65_v20 = vld [vmem:[#allocation6 + $0x30] sm:$0xff]  ;;  %v70_v23 = vsub.f32 %v54_v8, %v62_v16  ;;  %v404_v24 = vsub.s32 %v146_v6, %v401_v7  ;;  %v66_v25 = vld [vmem:[#allocation6 + $0x38] sm:$0xff]  ;;  %v71_v26 = vsub.f32 %v55_v9, %v63_v18  ;;  %v72_v27 = vsub.f32 %v56_v10, %v64_v19 }
  0x2b   :  { %v73_v28 = vsub.f32 %v57_v11, %v65_v20  ;;  %v76_v29 = vmul.f32 %v67_v17, %v67_v17  ;;  %v74_v30 = vsub.f32 %v58_v12, %v66_v25  ;;  %v77_v31 = vmul.f32 %v68_v21, %v68_v21  ;;  %p337_p5 = por %p336_p4, %p335_p3 }
  0x2c   :  { %v78_v32 = vmul.f32 %v69_v22, %v69_v22  ;;  %v79_v33 = vmul.f32 %v70_v23, %v70_v23  ;;  %v80_v34 = vmul.f32 %v71_v26, %v71_v26  ;;  %v81_v35 = vmul.f32 %v72_v27, %v72_v27 }
  0x2d   :  { %v82_v36 = vmul.f32 %v73_v28, %v73_v28  ;;  %v84_v37 = vrot.slane %v76_v29, 4  ;;  %v83_v38 = vmul.f32 %v74_v30, %v74_v30  ;;  %v90_v39 = vrot.slane %v77_v31, 4  ;;  %p338_p6 = pnand %p337_p5, %p331_p2 }
  0x2e   :  { %v96_v40 = vrot.slane %v78_v32, 4  ;;  %v102_v41 = vrot.slane %v79_v33, 4  ;;  %v108_v43 = vrot.slane %v80_v34, 4  ;;  %v114_v44 = vrot.slane %v81_v35, 4 }
  0x2f   :  { %v85_v42 = vadd.f32 %v84_v37, %v76_v29  ;;  %v120_v45 = vrot.slane %v82_v36, 4  ;;  %v91_v46 = vadd.f32 %v90_v39, %v77_v31  ;;  %v126_v49 = vrot.slane %v83_v38, 4 }
  0x30   :  { %v97_v47 = vadd.f32 %v96_v40, %v78_v32  ;;  %v103_v48 = vadd.f32 %v102_v41, %v79_v33  ;;  %v109_v51 = vadd.f32 %v108_v43, %v80_v34  ;;  %v115_v52 = vadd.f32 %v114_v44, %v81_v35 }
  0x31   :  { %v86_v50 = vrot.slane %v85_v42, 2  ;;  %v121_v53 = vadd.f32 %v120_v45, %v82_v36  ;;  %v92_v54 = vrot.slane %v91_v46, 2  ;;  %v127_v57 = vadd.f32 %v126_v49, %v83_v38 }
  0x32   :  { %v98_v55 = vrot.slane %v97_v47, 2  ;;  %v104_v56 = vrot.slane %v103_v48, 2  ;;  %v110_v59 = vrot.slane %v109_v51, 2  ;;  %v116_v60 = vrot.slane %v115_v52, 2 }
  0x33   :  { %v87_v58 = vadd.f32 %v86_v50, %v85_v42  ;;  %v122_v61 = vrot.slane %v121_v53, 2  ;;  %v93_v62 = vadd.f32 %v92_v54, %v91_v46  ;;  %v128_v1 = vrot.slane %v127_v57, 2 }
  0x34   :  { %v99_v63 = vadd.f32 %v98_v55, %v97_v47  ;;  %v105_v0 = vadd.f32 %v104_v56, %v103_v48  ;;  %v111_v3 = vadd.f32 %v110_v59, %v109_v51  ;;  %v117_v4 = vadd.f32 %v116_v60, %v115_v52 }
  0x35   :  { %v88_v2 = vrot.slane %v87_v58, 1  ;;  %v123_v5 = vadd.f32 %v122_v61, %v121_v53  ;;  %v94_v6 = vrot.slane %v93_v62, 1  ;;  %v129_v10 = vadd.f32 %v128_v1, %v127_v57 }
  0x36   :  { %v100_v8 = vrot.slane %v99_v63, 1  ;;  %v106_v9 = vrot.slane %v105_v0, 1  ;;  %v112_v12 = vrot.slane %v111_v3, 1  ;;  %v118_v13 = vrot.slane %v117_v4, 1 }
  0x37   :  { %v89_v11 = vadd.f32 %v88_v2, %v87_v58  ;;  %v124_v14 = vrot.slane %v123_v5, 1  ;;  %v95_v15 = vadd.f32 %v94_v6, %v93_v62  ;;  %v130_v18 = vrot.slane %v129_v10, 1 }
  0x38   :  { %v101_v16 = vadd.f32 %v100_v8, %v99_v63  ;;  %v107_v17 = vadd.f32 %v106_v9, %v105_v0  ;;  %v113_v19 = vadd.f32 %v112_v12, %v111_v3  ;;  %v119_v20 = vadd.f32 %v118_v13, %v117_v4 }
  0x39   :  { %v125_v21 = vadd.f32 %v124_v14, %v123_v5  ;;  %v131_v22 = vadd.f32 %v130_v18, %v129_v10  ;;  %v140_v23 = vcombine.low %v89_v11, %v95_v15  ;;  %v199_v35 = vsub.s32 0, %v401_v7 }
  0x3a   :  { %v141_v25 = vcombine.low %v101_v16, %v107_v17  ;;  %v142_v26 = vcombine.low %v113_v19, %v119_v20  ;;  %v203_v37 = vsub.s32 1, %v401_v7  ;;  %v207_v38 = vsub.s32 2, %v401_v7 }
  0x3b   :  { %v143_v27 = vcombine.low %v125_v21, %v131_v22  ;;  %v150_v28 = vrot.slane %v140_v23, %v404_v24  ;;  %v211_v39 = vsub.s32 3, %v401_v7  ;;  %v215_v41 = vsub.s32 4, %v401_v7 }
  0x3c   :  { %v157_v29 = vrot.slane %v141_v25, %v404_v24  ;;  %v164_v30 = vrot.slane %v142_v26, %v404_v24  ;;  %v219_v42 = vsub.s32 5, %v401_v7  ;;  %v223_v47 = vsub.s32 6, %v401_v7 }
  0x3d   :  { %v171_v31 = vrot.slane %v143_v27, %v404_v24  ;;  %v227_v53 = vsub.s32 7, %v401_v7 }
  0x3e   :  { %v172_v32 = vcombine.low %v150_v28, %v157_v29 }
  0x3f   :  { %v173_v33 = vcombine.low %v164_v30, %v171_v31 }
  0x40   :  { %v180_v34 = vrot.slane %v172_v32, %v404_v24 }
  0x41   :  { %v187_v36 = vrot.slane %v173_v33, %v404_v24 }
  0x43   :  { %v188_v40 = vcombine.low %v180_v34, %v187_v36 }
  0x45   :  { %v200_v43 = vrot.slane %v188_v40, %v199_v35  ;;  %v204_v44 = vrot.slane %v188_v40, %v203_v37  ;;  %v208_v45 = vrot.slane %v188_v40, %v207_v38  ;;  %v212_v46 = vrot.slane %v188_v40, %v211_v39 }
  0x46   :  { %v216_v48 = vrot.slane %v188_v40, %v215_v41  ;;  %v220_v52 = vrot.slane %v188_v40, %v219_v42  ;;  %v224_v56 = vrot.slane %v188_v40, %v223_v47  ;;  %v228_v59 = vrot.slane %v188_v40, %v227_v53 }
  0x47   :  { %v238_v24 = vsel %vm237_vm0, %v200_v43, 0.0  ;;  %v239_v49 = vsel %vm237_vm0, %v204_v44, 0.0  ;;  %v241_v50 = vsel %vm237_vm0, %v208_v45, 0.0  ;;  %v243_v54 = vsel %vm237_vm0, %v212_v46, 0.0 }
  0x48   :  { %v240_v51 = vadd.f32 %v239_v49, %v238_v24  ;;  %v245_v57 = vsel %vm237_vm0, %v216_v48, 0.0  ;;  %v247_v60 = vsel %vm237_vm0, %v220_v52, 0.0  ;;  %v249_v62 = vsel %vm237_vm0, %v224_v56, 0.0 }
  0x49   :  { %v251_v0 = vsel %vm237_vm0, %v228_v59, 0.0 }
  0x4a   :  { %v242_v55 = vadd.f32 %v241_v50, %v240_v51 }
  0x4c   :  { %v244_v58 = vadd.f32 %v243_v54, %v242_v55 }
  0x4e   :  { %v246_v61 = vadd.f32 %v245_v57, %v244_v58 }
  0x50   :  { %v248_v63 = vadd.f32 %v247_v60, %v246_v61 }
  0x52   :  { %v250_v1 = vadd.f32 %v249_v62, %v248_v63 }
  0x54   :  { %v252_v2 = vadd.f32 %v251_v0, %v250_v1 }
  0x56   :  { %253 = vadd.xlane.f32.xlu0 %v252_v2 }
  0xe3   :  { %v254_v7 = vpop.xlane.xlu0 %253 }
  0xe4   :  { %v255_v3 = vrot.slane %v254_v7, 4 }
  0xe6   :  { %v256_v4 = vadd.f32 %v255_v3, %v254_v7 }
  0xe8   :  { %v257_v5 = vrot.slane %v256_v4, 2 }
  0xea   :  { %v258_v6 = vadd.f32 %v257_v5, %v256_v4 }
  0xec   :  { %v259_v8 = vrot.slane %v258_v6, 1 }
  0xee   :  { %v260_v9 = vadd.f32 %v259_v8, %v258_v6 }
  0xf0   :  { %280 = vpush %v260_v9 }
 0x121   :  { %s281_s5 = spop %280 }
 0x122   :  { %v262_v10 = vstv %s281_s5 }
 0x123   :  { %263 = vst [vmem:[#allocation8] sm:$0xff] %v262_v10 }
 0x124   :  { %341 = shalt.err (!%p338_p6)
}
 0x125   :  { %s342_s9 = scalar_lea.hbm %s442_s2, 128 }
 0x126   :  { %p343_p7 = scmp.ne.s32.totalorder %s442_s2, %s342_s9  ;;  %p346_p8 = scmp.lt.u32.totalorder %s342_s9, %s442_s2 }
 0x128   :  { %p348_p9 = pnand %p346_p8, %p343_p7 }
 0x12a   :  { %351 = shalt.err (!%p348_p9)
}
 0x12b   :  { %273 = dma.vmem_to_hbm [thread:$0]  %s271_s4, 128, %s442_s2, [#allocation5]  }
 0x12c   :  { %356 = dma.done.wait [#allocation5], 128  }
 0x12d   :  { %357 = vsyncadd [#allocation5], 4294967168 }
 0x12e   :  { %277 = vsyncpa [#allocation4], 1 }
 0x12f   :  { %278 = vsyncpa [#allocation7], 1 }
 0x130   :  { %279 = vsyncpa [#allocation5], 1 }

</bundles_post_ra>
